<compile_context>
chip_gen: v5e
topology: v5e:2x2
jax: 0.10.0
libtpu: 0.0.40
codegen_flags: <defaults>
</compile_context>

<pallas_src>
import functools

import jax
import jax.numpy as jnp
from jax.experimental import pallas as pl
from jax.experimental.pallas import tpu as pltpu


def dgcnn_kernel(x_ref, adj_ref,
                 w1a_ref, b1a_ref, w1b_ref, b1b_ref,
                 w2a_ref, b2a_ref, w2b_ref, b2b_ref,
                 out_ref, *, batch_block):
    """One grid step processes `batch_block` batch elements, one chunk at a time.

    x_ref   : (Bt, C_in, L)  native NCL activations (compute dtype)
    adj_ref : (Bt, H, H)     per-batch adjacency (compute dtype)
    wXY/bXY : conv weights (compute dtype) / biases shaped (C, 1) in f32
    out_ref : (Bt, O, L)     log-softmax output (native layout)
    """

    def conv1x1(w_ref, b_ref, a):
        # kernel_size=1 Conv1d == channel matmul; f32 accumulation + f32 bias.
        return jnp.dot(w_ref[...], a.astype(w_ref.dtype),
                       preferred_element_type=jnp.float32) + b_ref[...]

    def process(b):
        xb = x_ref[b]                         # (C_in, L)
        adj_b = adj_ref[b]                    # (H, H)

        # ---- layer 1: relu(conv1) -> conv2 -> bmm(adj, .) -> relu ----
        h = jnp.maximum(conv1x1(w1a_ref, b1a_ref, xb), 0.0)
        h = conv1x1(w1b_ref, b1b_ref, h)
        h = jnp.dot(adj_b, h.astype(adj_b.dtype),
                    preferred_element_type=jnp.float32)
        h = jnp.maximum(h, 0.0)

        # ---- layer 2: relu(conv1) -> conv2 -> bmm(adj, .) ----
        g = jnp.maximum(conv1x1(w2a_ref, b2a_ref, h), 0.0)
        g = conv1x1(w2b_ref, b2b_ref, g)
        z = jnp.dot(adj_b, g.astype(adj_b.dtype),
                    preferred_element_type=jnp.float32)

        # ---- log_softmax over the channel axis (torch dim=1), f32 math ----
        z = z - jnp.max(z, axis=0, keepdims=True)
        lse = jnp.log(jnp.sum(jnp.exp(z), axis=0, keepdims=True))
        out_ref[b] = (z - lse).astype(out_ref.dtype)

    if batch_block <= 8:
        # Short, fixed trip count: static unroll (each iteration only touches
        # its own ref slices, so live ranges stay per-chunk).
        for b in range(batch_block):
            process(b)
    else:
        # Larger blocks: real scf.for keeps code size and live ranges bounded.
        @pl.loop(0, batch_block)
        def _(b):
            process(b)


def _default_batch_block(B, C_in, H, O, L, in_itemsize, out_itemsize):
    """Pick Bt so the double-buffered per-step VMEM footprint fits ~24 MiB
    (safe on v7x's 64 MiB VMEM) and, when possible, the grid has >= 2 steps
    so the "parallel" axis can shard across both v7x TensorCores."""
    def footprint(bt):
        x_b = bt * C_in * L * in_itemsize
        adj_b = bt * H * H * in_itemsize
        out_b = bt * O * L * out_itemsize
        return 2 * (x_b + adj_b + out_b)          # double-buffered

    budget = 24 << 20
    bt = B
    while bt > 1 and (footprint(bt) > budget or B // bt < 2):
        nxt = bt // 2
        if nxt == 0 or B % nxt != 0:
            break
        bt = nxt
    return bt


def dgcnn_forward(x, adj, params, *, batch_block=None,
                  compute_dtype=jnp.bfloat16, out_dtype=jnp.float32):
    B, C_in, L = x.shape
    H = params["w1a"].shape[0]
    O = params["w2a"].shape[0]
    # Shared adj across both layers forces hidden_size == out_features.
    assert H == O, "shared adj requires hidden_size == out_features"
    assert adj.shape == (B, H, H)

    # Lane-dense sequence axis: pad L to a multiple of 128 (padded columns are
    # independent through every op and sliced off at the end).
    Lp = ((L + 127) // 128) * 128
    if Lp != L:
        x = jnp.pad(x, ((0, 0), (0, 0), (0, Lp - L)))

    in_itemsize = jnp.dtype(compute_dtype).itemsize
    out_itemsize = jnp.dtype(out_dtype).itemsize
    if batch_block is None:
        batch_block = _default_batch_block(B, C_in, H, O, Lp,
                                           in_itemsize, out_itemsize)
    Bt = batch_block
    assert B % Bt == 0, "batch_block must divide batch size"
    nb = B // Bt

    # MXU operands in compute dtype (default bf16); accumulation stays f32.
    x_c = x.astype(compute_dtype)
    adj_c = adj.astype(compute_dtype)
    w1a = params["w1a"].astype(compute_dtype)
    w1b = params["w1b"].astype(compute_dtype)
    w2a = params["w2a"].astype(compute_dtype)
    w2b = params["w2b"].astype(compute_dtype)
    # Biases stay f32, shaped (C, 1) to broadcast over the lane axis in-kernel.
    b1a = params["b1a"].reshape(H, 1).astype(jnp.float32)
    b1b = params["b1b"].reshape(H, 1).astype(jnp.float32)
    b2a = params["b2a"].reshape(O, 1).astype(jnp.float32)
    b2b = params["b2b"].reshape(O, 1).astype(jnp.float32)

    def const(shape):
        # grid-invariant block (constant index map -> fetched once)
        return pl.BlockSpec(shape, lambda i, _n=len(shape): (0,) * _n)

    kernel = functools.partial(dgcnn_kernel, batch_block=Bt)

    out = pl.pallas_call(
        kernel,
        out_shape=jax.ShapeDtypeStruct((B, O, Lp), out_dtype),
        grid_spec=pltpu.PrefetchScalarGridSpec(
            num_scalar_prefetch=0,
            grid=(nb,),
            in_specs=[
                pl.BlockSpec((Bt, C_in, Lp), lambda i: (i, 0, 0)),  # x block
                pl.BlockSpec((Bt, H, H), lambda i: (i, 0, 0)),      # adj block
                const((H, C_in)), const((H, 1)),                    # layer1 conv1
                const((H, H)),    const((H, 1)),                    # layer1 conv2
                const((O, H)),    const((O, 1)),                    # layer2 conv1
                const((O, O)),    const((O, 1)),                    # layer2 conv2
            ],
            out_specs=pl.BlockSpec((Bt, O, Lp), lambda i: (i, 0, 0)),
        ),
        compiler_params=pltpu.CompilerParams(dimension_semantics=("parallel",)),
    )(x_c, adj_c, w1a, b1a, w1b, b1b, w2a, b2a, w2b, b2b)

    if Lp != L:
        out = out[..., :L]
    return out


def dgcnn_reference(x, adj, params):
    """Plain-JAX reference mirroring the PyTorch forward, for verification."""
    def conv1x1(x, w, b):                       # x:(B,Ci,L) w:(Co,Ci) b:(Co,)
        return jnp.einsum("oi,bil->bol", w, x) + b[None, :, None]

    h = jax.nn.relu(conv1x1(x, params["w1a"], params["b1a"]))
    h = conv1x1(h, params["w1b"], params["b1b"])
    h = jnp.einsum("bmh,bhl->bml", adj, h)
    h = jax.nn.relu(h)
    g = jax.nn.relu(conv1x1(h, params["w2a"], params["b2a"]))
    g = conv1x1(g, params["w2b"], params["b2b"])
    g = jnp.einsum("bmh,bhl->bml", adj, g)
    return jax.nn.log_softmax(g, axis=1)


def init_params(key, in_features, hidden_size, out_features):
    """Deterministic Conv1d-style (uniform fan-in) init; shapes match nn.Conv1d(k=1)."""
    ks = jax.random.split(key, 8)

    def u(k, shape, fan_in):
        bound = 1.0 / jnp.sqrt(float(fan_in))
        return jax.random.uniform(k, shape, jnp.float32, -bound, bound)

    return {
        "w1a": u(ks[0], (hidden_size, in_features), in_features),
        "b1a": u(ks[1], (hidden_size,), in_features),
        "w1b": u(ks[2], (hidden_size, hidden_size), hidden_size),
        "b1b": u(ks[3], (hidden_size,), hidden_size),
        "w2a": u(ks[4], (out_features, hidden_size), hidden_size),
        "b2a": u(ks[5], (out_features,), hidden_size),
        "w2b": u(ks[6], (out_features, out_features), out_features),
        "b2b": u(ks[7], (out_features,), out_features),
    }


if __name__ == "__main__":
    # Small shapes; L=128 is already lane-dense. hidden_size == out_features is
    # required by the shared adj (see note above).
    B, C_in, H, O, L = 2, 4, 32, 32, 128

    key = jax.random.PRNGKey(0)
    kx, kadj, kp = jax.random.split(key, 3)
    x = jax.random.normal(kx, (B, C_in, L), jnp.float32)
    adj = jax.random.uniform(kadj, (B, H, H), jnp.float32)
    params = init_params(kp, C_in, H, O)

    ref = dgcnn_reference(x, adj, params)

    # Default path: bf16 MXU operands, f32 accumulation / bias / softmax math.
    out_bf16 = jax.block_until_ready(dgcnn_forward(x, adj, params))
    assert out_bf16.shape == (B, O, L)
    assert jnp.allclose(out_bf16, ref, atol=2e-1, rtol=5e-2), \
        "Pallas bf16-operand output mismatch vs reference"

    # Full-f32 path for a tight numerical check of the kernel structure.
    out_f32 = jax.block_until_ready(
        dgcnn_forward(x, adj, params, compute_dtype=jnp.float32))
    assert out_f32.shape == (B, O, L)
    assert jnp.allclose(out_f32, ref, atol=1e-4, rtol=1e-4), \
        "Pallas f32 output mismatch vs reference"

    print("KERNEL_OK")
</pallas_src>

<mosaic_0001>
module attributes {stable_mosaic.version = 11 : i64} {
  func.func @dgcnn_kernel(%arg0: i32, %arg1: memref<1x4x128xbf16, #tpu.memory_space<vmem>>, %arg2: memref<1x32x32xbf16, #tpu.memory_space<vmem>>, %arg3: memref<32x4xbf16, #tpu.memory_space<vmem>>, %arg4: memref<32x1xf32, #tpu.memory_space<vmem>>, %arg5: memref<32x32xbf16, #tpu.memory_space<vmem>>, %arg6: memref<32x1xf32, #tpu.memory_space<vmem>>, %arg7: memref<32x32xbf16, #tpu.memory_space<vmem>>, %arg8: memref<32x1xf32, #tpu.memory_space<vmem>>, %arg9: memref<32x32xbf16, #tpu.memory_space<vmem>>, %arg10: memref<32x1xf32, #tpu.memory_space<vmem>>, %arg11: memref<1x32x128xf32, #tpu.memory_space<vmem>>) attributes {dimension_semantics = [#tpu.dimension_semantics<parallel>], iteration_bounds = array<i64: 2>, scalar_prefetch = 0 : i64, scratch_operands = 0 : i64, tpu.core_type = #tpu.core_type<tc>, window_params = [{transform_indices = @transform_0, window_bounds = array<i64: 1, 4, 128>}, {transform_indices = @transform_1, window_bounds = array<i64: 1, 32, 32>}, {pipeline_mode = #tpu.pipeline_mode<synchronous>, transform_indices = @transform_2, window_bounds = array<i64: 32, 4>}, {pipeline_mode = #tpu.pipeline_mode<synchronous>, transform_indices = @transform_3, window_bounds = array<i64: 32, 1>}, {pipeline_mode = #tpu.pipeline_mode<synchronous>, transform_indices = @transform_4, window_bounds = array<i64: 32, 32>}, {pipeline_mode = #tpu.pipeline_mode<synchronous>, transform_indices = @transform_5, window_bounds = array<i64: 32, 1>}, {pipeline_mode = #tpu.pipeline_mode<synchronous>, transform_indices = @transform_6, window_bounds = array<i64: 32, 32>}, {pipeline_mode = #tpu.pipeline_mode<synchronous>, transform_indices = @transform_7, window_bounds = array<i64: 32, 1>}, {pipeline_mode = #tpu.pipeline_mode<synchronous>, transform_indices = @transform_8, window_bounds = array<i64: 32, 32>}, {pipeline_mode = #tpu.pipeline_mode<synchronous>, transform_indices = @transform_9, window_bounds = array<i64: 32, 1>}, {transform_indices = @transform_10, window_bounds = array<i64: 1, 32, 128>}]} {
    %c0 = arith.constant 0 : index
    %c0_0 = arith.constant 0 : index
    %c0_1 = arith.constant 0 : index
    %0 = vector.load %arg1[%c0, %c0_0, %c0_1] : memref<1x4x128xbf16, #tpu.memory_space<vmem>>, vector<1x4x128xbf16>
    %1 = vector.shape_cast %0 : vector<1x4x128xbf16> to vector<4x128xbf16>
    %c0_2 = arith.constant 0 : index
    %c0_3 = arith.constant 0 : index
    %c0_4 = arith.constant 0 : index
    %2 = vector.load %arg2[%c0_2, %c0_3, %c0_4] : memref<1x32x32xbf16, #tpu.memory_space<vmem>>, vector<1x32x32xbf16>
    %3 = vector.shape_cast %2 : vector<1x32x32xbf16> to vector<32x32xbf16>
    %c0_5 = arith.constant 0 : index
    %c0_6 = arith.constant 0 : index
    %4 = vector.load %arg3[%c0_5, %c0_6] : memref<32x4xbf16, #tpu.memory_space<vmem>>, vector<32x4xbf16>
    %cst = arith.constant dense<0.000000e+00> : vector<32x128xf32>
    %5 = tpu.matmul %4, %1, %cst {dimension_numbers = #tpu.dot_dimension_numbers<[1], [0], [0], [1], [0, 0, 1, 1], [], []>} : vector<32x4xbf16>, vector<4x128xbf16>, vector<32x128xf32> -> vector<32x128xf32>
    %c0_7 = arith.constant 0 : index
    %c0_8 = arith.constant 0 : index
    %6 = vector.load %arg4[%c0_7, %c0_8] : memref<32x1xf32, #tpu.memory_space<vmem>>, vector<32x1xf32>
    %7 = vector.broadcast %6 : vector<32x1xf32> to vector<32x128xf32>
    %8 = arith.addf %5, %7 : vector<32x128xf32>
    %cst_9 = arith.constant 0.000000e+00 : f32
    %9 = vector.broadcast %cst_9 : f32 to vector<32x128xf32>
    %10 = arith.maximumf %8, %9 : vector<32x128xf32>
    %c0_10 = arith.constant 0 : index
    %c0_11 = arith.constant 0 : index
    %11 = vector.load %arg5[%c0_10, %c0_11] : memref<32x32xbf16, #tpu.memory_space<vmem>>, vector<32x32xbf16>
    %12 = arith.truncf %10 : vector<32x128xf32> to vector<32x128xbf16>
    %cst_12 = arith.constant dense<0.000000e+00> : vector<32x128xf32>
    %13 = tpu.matmul %11, %12, %cst_12 {dimension_numbers = #tpu.dot_dimension_numbers<[1], [0], [0], [1], [0, 0, 1, 1], [], []>} : vector<32x32xbf16>, vector<32x128xbf16>, vector<32x128xf32> -> vector<32x128xf32>
    %c0_13 = arith.constant 0 : index
    %c0_14 = arith.constant 0 : index
    %14 = vector.load %arg6[%c0_13, %c0_14] : memref<32x1xf32, #tpu.memory_space<vmem>>, vector<32x1xf32>
    %15 = vector.broadcast %14 : vector<32x1xf32> to vector<32x128xf32>
    %16 = arith.addf %13, %15 : vector<32x128xf32>
    %17 = arith.truncf %16 : vector<32x128xf32> to vector<32x128xbf16>
    %cst_15 = arith.constant dense<0.000000e+00> : vector<32x128xf32>
    %18 = tpu.matmul %3, %17, %cst_15 {dimension_numbers = #tpu.dot_dimension_numbers<[1], [0], [0], [1], [0, 0, 1, 1], [], []>} : vector<32x32xbf16>, vector<32x128xbf16>, vector<32x128xf32> -> vector<32x128xf32>
    %cst_16 = arith.constant 0.000000e+00 : f32
    %19 = vector.broadcast %cst_16 : f32 to vector<32x128xf32>
    %20 = arith.maximumf %18, %19 : vector<32x128xf32>
    %c0_17 = arith.constant 0 : index
    %c0_18 = arith.constant 0 : index
    %21 = vector.load %arg7[%c0_17, %c0_18] : memref<32x32xbf16, #tpu.memory_space<vmem>>, vector<32x32xbf16>
    %22 = arith.truncf %20 : vector<32x128xf32> to vector<32x128xbf16>
    %cst_19 = arith.constant dense<0.000000e+00> : vector<32x128xf32>
    %23 = tpu.matmul %21, %22, %cst_19 {dimension_numbers = #tpu.dot_dimension_numbers<[1], [0], [0], [1], [0, 0, 1, 1], [], []>} : vector<32x32xbf16>, vector<32x128xbf16>, vector<32x128xf32> -> vector<32x128xf32>
    %c0_20 = arith.constant 0 : index
    %c0_21 = arith.constant 0 : index
    %24 = vector.load %arg8[%c0_20, %c0_21] : memref<32x1xf32, #tpu.memory_space<vmem>>, vector<32x1xf32>
    %25 = vector.broadcast %24 : vector<32x1xf32> to vector<32x128xf32>
    %26 = arith.addf %23, %25 : vector<32x128xf32>
    %cst_22 = arith.constant 0.000000e+00 : f32
    %27 = vector.broadcast %cst_22 : f32 to vector<32x128xf32>
    %28 = arith.maximumf %26, %27 : vector<32x128xf32>
    %c0_23 = arith.constant 0 : index
    %c0_24 = arith.constant 0 : index
    %29 = vector.load %arg9[%c0_23, %c0_24] : memref<32x32xbf16, #tpu.memory_space<vmem>>, vector<32x32xbf16>
    %30 = arith.truncf %28 : vector<32x128xf32> to vector<32x128xbf16>
    %cst_25 = arith.constant dense<0.000000e+00> : vector<32x128xf32>
    %31 = tpu.matmul %29, %30, %cst_25 {dimension_numbers = #tpu.dot_dimension_numbers<[1], [0], [0], [1], [0, 0, 1, 1], [], []>} : vector<32x32xbf16>, vector<32x128xbf16>, vector<32x128xf32> -> vector<32x128xf32>
    %c0_26 = arith.constant 0 : index
    %c0_27 = arith.constant 0 : index
    %32 = vector.load %arg10[%c0_26, %c0_27] : memref<32x1xf32, #tpu.memory_space<vmem>>, vector<32x1xf32>
    %33 = vector.broadcast %32 : vector<32x1xf32> to vector<32x128xf32>
    %34 = arith.addf %31, %33 : vector<32x128xf32>
    %35 = arith.truncf %34 : vector<32x128xf32> to vector<32x128xbf16>
    %cst_28 = arith.constant dense<0.000000e+00> : vector<32x128xf32>
    %36 = tpu.matmul %3, %35, %cst_28 {dimension_numbers = #tpu.dot_dimension_numbers<[1], [0], [0], [1], [0, 0, 1, 1], [], []>} : vector<32x32xbf16>, vector<32x128xbf16>, vector<32x128xf32> -> vector<32x128xf32>
    %cst_29 = arith.constant dense<0xFF800000> : vector<128xf32>
    %37 = vector.multi_reduction <maximumf>, %36, %cst_29 [0] : vector<32x128xf32> to vector<128xf32>
    %38 = vector.shape_cast %37 : vector<128xf32> to vector<1x128xf32>
    %39 = vector.broadcast %38 : vector<1x128xf32> to vector<32x128xf32>
    %40 = arith.subf %36, %39 : vector<32x128xf32>
    %41 = math.exp %40 : vector<32x128xf32>
    %cst_30 = arith.constant dense<0.000000e+00> : vector<128xf32>
    %42 = vector.multi_reduction <add>, %41, %cst_30 [0] : vector<32x128xf32> to vector<128xf32>
    %43 = vector.shape_cast %42 : vector<128xf32> to vector<1x128xf32>
    %44 = math.log %43 : vector<1x128xf32>
    %45 = vector.broadcast %44 : vector<1x128xf32> to vector<32x128xf32>
    %46 = arith.subf %40, %45 : vector<32x128xf32>
    %c0_31 = arith.constant 0 : index
    %c0_32 = arith.constant 0 : index
    %c0_33 = arith.constant 0 : index
    %47 = vector.load %arg11[%c0_31, %c0_32, %c0_33] : memref<1x32x128xf32, #tpu.memory_space<vmem>>, vector<1x32x128xf32>
    %48 = vector.shape_cast %47 : vector<1x32x128xf32> to vector<32x128xf32>
    %49 = vector.shape_cast %46 : vector<32x128xf32> to vector<1x32x128xf32>
    tpu.vector_store %arg11[%c0_31, %c0_32, %c0_33], %49 {strides = array<i32>} : memref<1x32x128xf32, #tpu.memory_space<vmem>>, vector<1x32x128xf32>,
    return
  }
  func.func @transform_0(%arg0: i32) -> (i32, i32, i32) {
    %c0_i32 = arith.constant 0 : i32
    %c0_i32_0 = arith.constant 0 : i32
    %c0_i32_1 = arith.constant 0 : i32
    return %arg0, %c0_i32, %c0_i32_0 : i32, i32, i32
  }
  func.func @transform_1(%arg0: i32) -> (i32, i32, i32) {
    %c0_i32 = arith.constant 0 : i32
    %c0_i32_0 = arith.constant 0 : i32
    %c0_i32_1 = arith.constant 0 : i32
    return %arg0, %c0_i32, %c0_i32_0 : i32, i32, i32
  }
  func.func @transform_2(%arg0: i32) -> (i32, i32) {
    %c0_i32 = arith.constant 0 : i32
    %c0_i32_0 = arith.constant 0 : i32
    %c0_i32_1 = arith.constant 0 : i32
    return %c0_i32, %c0_i32_0 : i32, i32
  }
  func.func @transform_3(%arg0: i32) -> (i32, i32) {
    %c0_i32 = arith.constant 0 : i32
    %c0_i32_0 = arith.constant 0 : i32
    %c0_i32_1 = arith.constant 0 : i32
    return %c0_i32, %c0_i32_0 : i32, i32
  }
  func.func @transform_4(%arg0: i32) -> (i32, i32) {
    %c0_i32 = arith.constant 0 : i32
    %c0_i32_0 = arith.constant 0 : i32
    %c0_i32_1 = arith.constant 0 : i32
    return %c0_i32, %c0_i32_0 : i32, i32
  }
  func.func @transform_5(%arg0: i32) -> (i32, i32) {
    %c0_i32 = arith.constant 0 : i32
    %c0_i32_0 = arith.constant 0 : i32
    %c0_i32_1 = arith.constant 0 : i32
    return %c0_i32, %c0_i32_0 : i32, i32
  }
  func.func @transform_6(%arg0: i32) -> (i32, i32) {
    %c0_i32 = arith.constant 0 : i32
    %c0_i32_0 = arith.constant 0 : i32
    %c0_i32_1 = arith.constant 0 : i32
    return %c0_i32, %c0_i32_0 : i32, i32
  }
  func.func @transform_7(%arg0: i32) -> (i32, i32) {
    %c0_i32 = arith.constant 0 : i32
    %c0_i32_0 = arith.constant 0 : i32
    %c0_i32_1 = arith.constant 0 : i32
    return %c0_i32, %c0_i32_0 : i32, i32
  }
  func.func @transform_8(%arg0: i32) -> (i32, i32) {
    %c0_i32 = arith.constant 0 : i32
    %c0_i32_0 = arith.constant 0 : i32
    %c0_i32_1 = arith.constant 0 : i32
    return %c0_i32, %c0_i32_0 : i32, i32
  }
  func.func @transform_9(%arg0: i32) -> (i32, i32) {
    %c0_i32 = arith.constant 0 : i32
    %c0_i32_0 = arith.constant 0 : i32
    %c0_i32_1 = arith.constant 0 : i32
    return %c0_i32, %c0_i32_0 : i32, i32
  }
  func.func @transform_10(%arg0: i32) -> (i32, i32, i32) {
    %c0_i32 = arith.constant 0 : i32
    %c0_i32_0 = arith.constant 0 : i32
    %c0_i32_1 = arith.constant 0 : i32
    return %arg0, %c0_i32, %c0_i32_0 : i32, i32, i32
  }
}

</mosaic_0001>

<bundles_post_ra>
// kernel: tpu_custom_call.1
= control target key start
LH: loop header
LB: loop body
LE: loop exit
PB: predicated region body
PF: predicated region fallthrough
CT: control target
= control target key end

     0   :  { %15 = vsyncpa [#allocation3], 0  ;;  %s1276_s0 = inlined_call_operand.vmem [shape: bf16[2,4,128], index: 0, kind: input, shape index: {}]   ;;  %s1277_s1 = inlined_call_operand.vmem [shape: bf16[2,32,32], index: 1, kind: input, shape index: {}]   ;;  %s1278_s2 = inlined_call_operand.vmem [shape: bf16[32,4], index: 2, kind: input, shape index: {}]   ;;  %s1279_s3 = inlined_call_operand.vmem [shape: f32[32,1], index: 3, kind: input, shape index: {}]   ;;  %s1280_s4 = inlined_call_operand.vmem [shape: bf16[32,32], index: 4, kind: input, shape index: {}]   ;;  %s1281_s5 = inlined_call_operand.vmem [shape: f32[32,1], index: 5, kind: input, shape index: {}]   ;;  %s1282_s6 = inlined_call_operand.vmem [shape: bf16[32,32], index: 6, kind: input, shape index: {}]   ;;  %s1283_s7 = inlined_call_operand.vmem [shape: f32[32,1], index: 7, kind: input, shape index: {}]   ;;  %s1284_s8 = inlined_call_operand.vmem [shape: bf16[32,32], index: 8, kind: input, shape index: {}]   ;;  %s1285_s9 = inlined_call_operand.vmem [shape: f32[32,1], index: 9, kind: input, shape index: {}]   ;;  %s1286_s10 = inlined_call_operand.hbm [shape: f32[2,32,128], index: 10, kind: output, shape index: {}]  }
   0x1   :  { %17 = vsyncpa [#allocation3 + $0x1], 0  ;;  %s1102_s13 = smov 0   ;;  %s1104_s14 = smov 0  }
   0x2   :  { %s1106_s15 = smov 0   ;;  %s1108_s16 = smov 0  }
   0x3 LB: > { %1288 = sst [smem:[#allocation5_spill]] %s1038_s15  ;;  %s1123_s17 = sadd.s32 4294967295, %s1042_s16   ;;  %s1042_s16 = sphi %s1108_s16, %s1296_s16   ;;  %s1038_s15 = sphi %s1106_s15, %s1293_s15   ;;  %s1034_s14 = sphi %s1104_s14, %s1295_s14   ;;  %s1030_s13 = sphi %s1102_s13, %s1294_s13  }
   0x4   : > { %s845_s18 = sadd.s32 4294967294, %s1042_s16   ;;  %s1127_s19 = sadd.s32 1, %s1042_s16  }
   0x5   : > { %s250_s20 = sadd.s32 1, %s1038_s15  ;;  %s247_s21 = ssub.s32 %s1042_s16, %s1127_s19 }
   0x6   : > { %p260_p0 = scmp.ne.s32.totalorder %s1038_s15, %s1034_s14  ;;  %p248_p1 = scmp.eq.s32.totalorder %s247_s21, 0 }
   0x7   : > { %p261_p2 = scmp.eq.s32.totalorder %s1123_s17, 1  ;;  %p266_p3 = scmp.ne.s32.totalorder %s1034_s14, %s1030_s13 }
   0x8   : > { %p267_p4 = scmp.eq.s32.totalorder %s845_s18, 1  ;;  %p848_p7 = scmp.ge.s32.totalorder %s1042_s16, 1 }
   0x9   : > { %s1138_s22 = scalar_select %p248_p1, %s1038_s15, %s250_s20  }
   0xa   : > { %p1140_p5 = por %p261_p2, %p260_p0  ;;  %p1144_p6 = por %p267_p4, %p266_p3 }
   0xb   : > { %1289 = sst [smem:[#allocation6_spill]] %s1138_s22  ;;  %p324_p8 = scmp.lt.s32.totalorder %s1042_s16, 3 }
   0xd   : > { %p325_p9 = pnand %p848_p7, %p324_p8 }
   0xe   : > { %p366_p10 = scmp.lt.s32.totalorder (!%p325_p9), %s1123_s17, 1  ;;  %s921_s15 = sshll.u32 (!%p325_p9), %s1123_s17, 5 }
   0xf   : > { %328 = sbr.rel (%p325_p9) target bundleno = 1044 (0x414), region = 60 }
  0x14   : > { %v387_v0 = vld [vmem:[%s1279_s3 + $0x10] sm:$0xff]  ;;  %v385_v1 = vld [vmem:[%s1279_s3] sm:$0xff]  ;;  %v1044_v2 = vmov 0   ;;  %s1158_s29 = scalar_select %p366_p10, %s1123_s17, 1  ;;  %vm426_vm0 = vcmask 1041408   ;;  %v388_v4 = vld [vmem:[%s1279_s3 + $0x18] sm:$0xff] }
  0x15   : > { %968 = vset.pattern.permute.xlu1 %v1044_v2  ;;  %967 = vset.pattern.permute.xlu0 %v1044_v2  ;;  %v386_v6 = vld [vmem:[%s1279_s3 + $0x8] sm:$0xff]  ;;  %v913_v8 = vld [vmem:[%s1278_s2] sm:$0xff]  ;;  %vm419_vm1 = vcmask 31744   ;;  %v569_v11 = vld [vmem:[%s1283_s7 + $0x18] sm:$0xff]  ;;  %vm493_vm2 = vcmask 261120  }
  0x16   : > { %401 = vperm.xlu0 %967, %v387_v0   ;;  %391 = vperm.xlu1 %968, %v385_v1   ;;  %s850_s30 = sshll.u32 %s1158_s29, 1  ;;  %v914_v7 = vld [vmem:[%s1278_s2 + $0x8] sm:$0xff]  ;;  %v459_v9 = vld [vmem:[%s1281_s5] sm:$0xff]  ;;  %v637_v13 = vld [vmem:[%s1285_s9 + $0x10] sm:$0xff]  ;;  %s910_s20 = sshll.u32 %s1158_s29, 4 }
  0x17   : > { %969 = vset.pattern.permute.xlu2 %v1044_v2  ;;  %s369_s18 = scalar_lea.vmem %s1276_s0, %s850_s30  ;;  %v460_v10 = vld [vmem:[%s1281_s5 + $0x8] sm:$0xff]  ;;  %v566_v12 = vld [vmem:[%s1283_s7] sm:$0xff]  ;;  %v638_v14 = vld [vmem:[%s1285_s9 + $0x18] sm:$0xff]  ;;  %s374_s21 = scalar_lea.vmem %s1277_s1, %s910_s20 }
  0x18   : > { %v376_v3 = vld [vmem:[%s369_s18] sm:$0x3]  ;;  %v636_v15 = vld [vmem:[%s1285_s9 + $0x8] sm:$0xff]  ;;  %v461_v16 = vld [vmem:[%s1281_s5 + $0x10] sm:$0xff]  ;;  %s363_s18 = sand.u32 1, %s1034_s14   ;;  %s767_s29 = scalar_lea.hbm %s1286_s10, %s921_s15 }
  0x19   : > { %v428_v5 = vsel %vm426_vm0, %v376_v3, 0  ;;  %475 = vperm.xlu2 %969, %v461_v16   ;;  %v462_v18 = vld [vmem:[%s1281_s5 + $0x18] sm:$0xff]  ;;  %v568_v22 = vld [vmem:[%s1283_s7 + $0x10] sm:$0xff]  ;;  %v567_v36 = vld [vmem:[%s1283_s7 + $0x8] sm:$0xff]  ;;  %s849_s20 = sshll.u32 %s363_s18, 5  ;;  %s770_s27 = sshll.u32 %s767_s29, 4  ;;  %s771_s27 = int_to_ptr.hbm [resolvable:$true] %s770_s27 }
  0x1a   : > { %922 = vmatpush.bf16.msra.mxu3 %v428_v5  ;;  %437 = vmatpush.bf16.msra.mxu0 %v428_v5  ;;  %v915_v38 = vld [vmem:[%s1280_s4] sm:$0xff]  ;;  %v916_v39 = vld [vmem:[%s1280_s4 + $0x8] sm:$0xff]  ;;  %s365_s25 = scalar_lea.vmem [#allocation2], %s849_s20  ;;  %s756_s17 = scalar_lea.sflag [#allocation3], %s363_s18 }
  0x1b   : > { %v635_v40 = vld [vmem:[%s1285_s9] sm:$0xff]  ;;  %v912_v56 = vld [vmem:[%s374_s21 + $0x8] sm:$0xff]  ;;  %s768_s26 = sshll.u32 %s365_s25, 4  ;;  %s994_s28 = sshra.s32 %s771_s27, 4  ;;  %s769_s26 = int_to_ptr.vmem [resolvable:$true] %s768_s26  ;;  %s995_s28 = int_to_ptr.hbm [resolvable:$true] %s994_s28 }
  0x1c   : > { %v911_v55 = vld [vmem:[%s374_s21] sm:$0xff]  ;;  %s996_s30 = scalar_lea.hbm %s995_s28, 32  ;;  %s1000_s20 = scalar_lea.hbm %s1286_s10, 64 }
  0x1d   : > { %862 = vmatmul.msk.bf16.vlgmr.msra.gmra.mxu3 %vm419_vm1, %v914_v7  ;;  %861 = vmatmul.msk.bf16.vlgmr.msra.gmra.mxu0 %vm419_vm1, %v913_v8  ;;  %v917_v3 = vld [vmem:[%s1282_s6] sm:$0xff]  ;;  %p997_p11 = scmp.ne.s32.totalorder %s995_s28, %s996_s30  ;;  %p1001_p0 = scmp.lt.s32.totalorder %s995_s28, %s1286_s10 }
  0x1e   : > { %406 = vperm.xlu0 %967, %v388_v4   ;;  %396 = vperm.xlu1 %968, %v386_v6   ;;  %v918_v4 = vld [vmem:[%s1282_s6 + $0x8] sm:$0xff]  ;;  %p1002_p1 = scmp.lt.s32.totalorder %s1000_s20, %s996_s30 }
  0x1f   : > { %p998_p12 = pnand %p997_p11, %p1140_p5 }
  0x20   : > { %p1003_p2 = por %p1002_p1, %p1001_p0 }
  0x21   : > { %480 = vperm.xlu2 %969, %v462_v18   ;;  %p999_p13 = pneg %p998_p12 }
  0x23   : > { %p1004_p3 = pnand %p1003_p2, %p999_p13 }
  0x26   : > { %465 = vperm.xlu0 %967, %v459_v9   ;;  %470 = vperm.xlu1 %968, %v460_v10  }
  0x29   : > { %582 = vperm.xlu2 %969, %v568_v22  }
  0x2e   : > { %587 = vperm.xlu0 %967, %v569_v11   ;;  %572 = vperm.xlu1 %968, %v566_v12  }
  0x31   : > { %577 = vperm.xlu2 %969, %v567_v36  }
  0x36   : > { %651 = vperm.xlu0 %967, %v637_v13   ;;  %656 = vperm.xlu1 %968, %v638_v14  }
  0x39   : > { %641 = vperm.xlu2 %969, %v635_v40  }
  0x3e   : > { %646 = vperm.xlu0 %967, %v636_v15  }
  0x73   : > { %v476_v41 = vpop.permute.xlu2 %475 }
  0x7b   : > { %v481_v44 = vpop.permute.xlu2 %480 }
  0x83   : > { %v583_v7 = vpop.permute.xlu2 %582 }
  0x88   : > { %v402_v19 = vpop.permute.xlu0 %401  ;;  %v392_v20 = vpop.permute.xlu1 %391 }
  0x8b   : > { %v578_v11 = vpop.permute.xlu2 %577 }
  0x90   : > { %v407_v24 = vpop.permute.xlu0 %406  ;;  %v397_v26 = vpop.permute.xlu1 %396 }
  0x93   : > { %v642_v36 = vpop.permute.xlu2 %641 }
  0x98   : > { %v471_v49 = vpop.permute.xlu1 %470  ;;  %v466_v52 = vpop.permute.xlu0 %465 }
  0x9a   : > { %v439_v17 = vpop.f32.mrf.mxu0 }
  0x9b   : > { %v440_v28 = vadd.f32 %v439_v17, %v392_v20 }
  0x9d   : > { %v449_v33 = vmax.f32 %v440_v28, 0.0 }
  0xa0   : > { %v444_v21 = vpop.f32.mrf.mxu3  ;;  %v588_v9 = vpop.permute.xlu0 %587 }
  0xa1   : > { %v445_v25 = vadd.f32 %v444_v21, %v402_v19  ;;  %v573_v15 = vpop.permute.xlu1 %572 }
  0xa2   : > { %v441_v23 = vpop.f32.mrf.mxu0 }
  0xa3   : > { %v442_v29 = vadd.f32 %v441_v23, %v397_v26  ;;  %v451_v31 = vmax.f32 %v445_v25, 0.0  ;;  %v919_v23 = vld [vmem:[%s1284_s8] sm:$0xff] }
  0xa5   : > { %v450_v34 = vmax.f32 %v442_v29, 0.0 }
  0xa7   : > { %v457_v37 = vpack.c.bf16 %v450_v34, %v449_v33 }
  0xa8   : > { %v446_v27 = vpop.f32.mrf.mxu3 }
  0xa9   : > { %v447_v30 = vadd.f32 %v446_v27, %v407_v24  ;;  %v920_v24 = vld [vmem:[%s1284_s8 + $0x8] sm:$0xff]  ;;  %v652_v27 = vpop.permute.xlu0 %651  ;;  %v657_v29 = vpop.permute.xlu1 %656 }
  0xab   : > { %v452_v32 = vmax.f32 %v447_v30, 0.0 }
  0xad   : > { %v458_v35 = vpack.c.bf16 %v452_v32, %v451_v31 }
  0xaf   : > { %506 = vmatpush.bf16.msra.mxu1 %v458_v35  ;;  %923 = vmatpush.bf16.msra.mxu2 %v458_v35 }
  0xb1   : > { %v647_v33 = vpop.permute.xlu0 %646 }
  0xb3   : > { %507 = vmatpush.bf16.msra.mxu1 %v457_v37  ;;  %924 = vmatpush.bf16.msra.mxu2 %v457_v37 }
  0xb6   : > { %871 = vmatmul.msk.bf16.vlgmr.msra.gmra.mxu1 %vm493_vm2, %v915_v38  ;;  %872 = vmatmul.msk.bf16.vlgmr.msra.gmra.mxu2 %vm493_vm2, %v916_v39 }
 0x133   : > { %v509_v42 = vpop.f32.mrf.mxu1 }
 0x134   : > { %v510_v53 = vadd.f32 %v509_v42, %v466_v52 }
 0x139   : > { %v514_v43 = vpop.f32.mrf.mxu2 }
 0x13a   : > { %v515_v47 = vadd.f32 %v514_v43, %v476_v41 }
 0x13b   : > { %v511_v45 = vpop.f32.mrf.mxu1 }
 0x13c   : > { %v512_v50 = vadd.f32 %v511_v45, %v471_v49 }
 0x13e   : > { %v519_v54 = vpack.c.bf16 %v512_v50, %v510_v53 }
 0x141   : > { %v516_v46 = vpop.f32.mrf.mxu2 }
 0x142   : > { %v517_v48 = vadd.f32 %v516_v46, %v481_v44 }
 0x144   : > { %v520_v51 = vpack.c.bf16 %v517_v48, %v515_v47 }
 0x146   : > { %543 = vmatpush.bf16.msrb.mxu2 %v520_v51 }
 0x14a   : > { %544 = vmatpush.bf16.msrb.mxu2 %v519_v54 }
 0x14d   : > { %881 = vmatmul.msk.bf16.vlgmr.msrb.gmra.mxu2 %vm493_vm2, %v911_v55 }
 0x15d   : > { %882 = vmatmul.msk.bf16.gmra.mxu2 %vm493_vm2, %v912_v56 }
 0x1d0   : > { %v546_v57 = vpop.f32.mrf.mxu2 }
 0x1d1   : > { %v556_v1 = vmax.f32 %v546_v57, 0.0 }
 0x1d8   : > { %v548_v58 = vpop.f32.mrf.mxu2 }
 0x1d9   : > { %v557_v63 = vmax.f32 %v548_v58, 0.0 }
 0x1db   : > { %v564_v2 = vpack.c.bf16 %v557_v63, %v556_v1 }
 0x1e0   : > { %v551_v59 = vpop.f32.mrf.mxu2 }
 0x1e1   : > { %v558_v61 = vmax.f32 %v551_v59, 0.0 }
 0x1e8   : > { %v553_v60 = vpop.f32.mrf.mxu2 }
 0x1e9   : > { %v559_v62 = vmax.f32 %v553_v60, 0.0 }
 0x1eb   : > { %v565_v0 = vpack.c.bf16 %v559_v62, %v558_v61 }
 0x1ed   : > { %612 = vmatpush.bf16.msrb.mxu3 %v565_v0 }
 0x1f1   : > { %613 = vmatpush.bf16.msrb.mxu3 %v564_v2 }
 0x1f4   : > { %891 = vmatmul.msk.bf16.vlgmr.msrb.gmra.mxu3 %vm493_vm2, %v917_v3 }
 0x204   : > { %892 = vmatmul.msk.bf16.gmra.mxu3 %vm493_vm2, %v918_v4 }
 0x277   : > { %v615_v5 = vpop.f32.mrf.mxu3 }
 0x278   : > { %v616_v16 = vadd.f32 %v615_v5, %v573_v15 }
 0x27a   : > { %v625_v21 = vmax.f32 %v616_v16, 0.0 }
 0x27f   : > { %v617_v6 = vpop.f32.mrf.mxu3 }
 0x280   : > { %v618_v13 = vadd.f32 %v617_v6, %v578_v11 }
 0x282   : > { %v626_v19 = vmax.f32 %v618_v13, 0.0 }
 0x284   : > { %v633_v22 = vpack.c.bf16 %v626_v19, %v625_v21 }
 0x287   : > { %v620_v8 = vpop.f32.mrf.mxu3 }
 0x288   : > { %v621_v10 = vadd.f32 %v620_v8, %v583_v7 }
 0x28a   : > { %v627_v17 = vmax.f32 %v621_v10, 0.0 }
 0x28f   : > { %v622_v12 = vpop.f32.mrf.mxu3 }
 0x290   : > { %v623_v14 = vadd.f32 %v622_v12, %v588_v9 }
 0x292   : > { %v628_v18 = vmax.f32 %v623_v14, 0.0 }
 0x294   : > { %v634_v20 = vpack.c.bf16 %v628_v18, %v627_v17 }
 0x296   : > { %681 = vmatpush.bf16.msrb.mxu0 %v634_v20 }
 0x29a   : > { %682 = vmatpush.bf16.msrb.mxu0 %v633_v22 }
 0x29d   : > { %901 = vmatmul.msk.bf16.vlgmr.msrb.gmra.mxu0 %vm493_vm2, %v919_v23 }
 0x2ad   : > { %902 = vmatmul.msk.bf16.gmra.mxu0 %vm493_vm2, %v920_v24 }
 0x31a   : > { %v684_v25 = vpop.f32.mrf.mxu0 }
 0x31b   : > { %v685_v37 = vadd.f32 %v684_v25, %v642_v36 }
 0x322   : > { %v686_v26 = vpop.f32.mrf.mxu0 }
 0x323   : > { %v687_v34 = vadd.f32 %v686_v26, %v647_v33 }
 0x325   : > { %v694_v38 = vpack.c.bf16 %v687_v34, %v685_v37 }
 0x32a   : > { %v689_v28 = vpop.f32.mrf.mxu0 }
 0x32b   : > { %v690_v31 = vadd.f32 %v689_v28, %v652_v27 }
 0x332   : > { %v691_v30 = vpop.f32.mrf.mxu0 }
 0x333   : > { %v692_v32 = vadd.f32 %v691_v30, %v657_v29 }
 0x335   : > { %v695_v35 = vpack.c.bf16 %v692_v32, %v690_v31 }
 0x337   : > { %702 = vmatpush.bf16.msrb.mxu1 %v695_v35 }
 0x33b   : > { %703 = vmatpush.bf16.msrb.mxu1 %v694_v38 }
 0x33e   : > { %903 = vmatmul.msk.bf16.vlgmr.msrb.gmra.mxu1 %vm493_vm2, %v911_v55 }
 0x34e   : > { %904 = vmatmul.msk.bf16.gmra.mxu1 %vm493_vm2, %v912_v56 }
 0x3bb   : > { %v705_v39 = vpop.f32.mrf.mxu1 }
 0x3c3   : > { %v707_v40 = vpop.f32.mrf.mxu1 }
 0x3c4   : > { %v715_v43 = vmax.f32 %v705_v39, %v707_v40 }
 0x3cb   : > { %v710_v41 = vpop.f32.mrf.mxu1 }
 0x3d3   : > { %v712_v42 = vpop.f32.mrf.mxu1 }
 0x3d4   : > { %v716_v44 = vmax.f32 %v710_v41, %v712_v42 }
 0x3d6   : > { %v717_v45 = vmax.f32 %v715_v43, %v716_v44 }
 0x3d8   : > { %v718_v46 = vrot.slane %v717_v45, 4 }
 0x3da   : > { %v719_v47 = vmax.f32 %v717_v45, %v718_v46 }
 0x3dc   : > { %v720_v48 = vrot.slane %v719_v47, 2 }
 0x3de   : > { %v721_v49 = vmax.f32 %v719_v47, %v720_v48 }
 0x3e0   : > { %v722_v50 = vrot.slane %v721_v49, 1 }
 0x3e2   : > { %v723_v51 = vmax.f32 %v721_v49, %v722_v50 }
 0x3e4   : > { %v724_v52 = vsub.f32 %v705_v39, %v723_v51  ;;  %v725_v53 = vsub.f32 %v707_v40, %v723_v51  ;;  %v726_v54 = vsub.f32 %v710_v41, %v723_v51  ;;  %v727_v57 = vsub.f32 %v712_v42, %v723_v51 }
 0x3e6   : > { %v728_v55 = vmul.f32 1.442695, %v724_v52  ;;  %v730_v58 = vmul.f32 1.442695, %v725_v53  ;;  %v732_v56 = vmul.f32 1.442695, %v726_v54 }
 0x3e7   : > { %v734_v59 = vmul.f32 1.442695, %v727_v57 }
 0x3e8   : > { %970 = vpow2.f32 %v728_v55 }
 0x3e9   : > { %972 = vpow2.f32 %v730_v58 }
 0x3ea   : > { %974 = vpow2.f32 %v732_v56 }
 0x3eb   : > { %976 = vpow2.f32 %v734_v59 }
 0x3ee   : > { %v971_v60 = vpop.eup %970 }
 0x3ef   : > { %v973_v61 = vpop.eup %972 }
 0x3f0   : > { %v736_v62 = vadd.f32 %v973_v61, %v971_v60  ;;  %v975_v63 = vpop.eup %974 }
 0x3f1   : > { %v977_v1 = vpop.eup %976 }
 0x3f2   : > { %v737_v0 = vadd.f32 %v975_v63, %v736_v62 }
 0x3f4   : > { %v738_v2 = vadd.f32 %v977_v1, %v737_v0 }
 0x3f6   : > { %v739_v3 = vrot.slane %v738_v2, 4 }
 0x3f8   : > { %v740_v4 = vadd.f32 %v739_v3, %v738_v2 }
 0x3fa   : > { %v741_v5 = vrot.slane %v740_v4, 2 }
 0x3fc   : > { %v742_v6 = vadd.f32 %v741_v5, %v740_v4 }
 0x3fe   : > { %v743_v7 = vrot.slane %v742_v6, 1 }
 0x400   : > { %v744_v8 = vadd.f32 %v743_v7, %v742_v6 }
 0x402   : > { %978 = vlog2.f32 %v744_v8 }
 0x408   : > { %v979_v9 = vpop.eup %978 }
 0x409   : > { %v746_v10 = vmul.f32 0.6931472, %v979_v9 }
 0x40b   : > { %v747_v11 = vsub.f32 %v724_v52, %v746_v10  ;;  %v748_v12 = vsub.f32 %v725_v53, %v746_v10  ;;  %v749_v13 = vsub.f32 %v726_v54, %v746_v10  ;;  %v750_v14 = vsub.f32 %v727_v57, %v746_v10 }
 0x40d   : > { %751 = vst [vmem:[%s365_s25] sm:$0xff] %v747_v11 }
 0x40e   : > { %752 = vst [vmem:[%s365_s25 + $0x8] sm:$0xff] %v748_v12 }
 0x40f   : > { %753 = vst [vmem:[%s365_s25 + $0x10] sm:$0xff] %v749_v13 }
 0x410   : > { %754 = vst [vmem:[%s365_s25 + $0x18] sm:$0xff] %v750_v14 }
 0x411   : > { %1007 = shalt.err (!%p1004_p3)
}
 0x412   : > { %s1045_s18 = smov 128   ;;  %s1046_s21 = smov 8  }
 0x413   : > { %925 = dma.vmem_to_hbm [thread:$0]  (%p1140_p5), %s769_s26, 512, %s771_s27, %s756_s17, %s1045_s18, %s1045_s18, %s1046_s21  }
 0x414 PF: > { %p931_p4 = scmp.ge.s32.totalorder %s1042_s16, 2  ;;  %s785_s29 = sand.u32 1, %s1030_s13  }
 0x415   : > { %s786_s25 = scalar_lea.sflag [#allocation3], %s785_s29 }
 0x416   : > { %p928_p7 = pnand %p931_p4, %p1144_p6 }
 0x418   : > { %p929_p8 = pneg %p928_p7 }
 0x41a   : > { %1025 = dma.done.wait (%p929_p8), %s786_s25, 512  }
 0x41b   : > { %1027 = vsyncadd (%p929_p8), %s786_s25, 4294966784  ;;  %s1292_s28 = sld [smem:[#allocation5_spill]]  ;;  %p20_p9 = scmp.ge.s32.totalorder %s1127_s19, 4  }
 0x41c   : > { %s1293_s15 = sld [smem:[#allocation6_spill]]  ;;  %s1294_s13 = smov %s1034_s14 }
 0x41d   : > { %s1296_s16 = smov %s1127_s19  ;;  %22 = sbr.rel (!%p20_p9) target bundleno = 3 (0x3), region = 98 }
 0x421   : > { %s1295_s14 = smov %s1292_s28 }
 0x422   :  { %792 = vsyncpa [#allocation3], 1 }
 0x423   :  { %794 = vsyncpa [#allocation3 + $0x1], 1 }

</bundles_post_ra>
